<compile_context>
chip_gen: v7x
topology: tpu7x:2x2x1
jax: 0.10.0
libtpu: 0.0.40
codegen_flags: <defaults>
</compile_context>

<pallas_src>
import functools

import jax
import jax.numpy as jnp
import numpy as np
from jax.experimental import pallas as pl
from jax.experimental.pallas import tpu as pltpu


# ----------------------------- Pallas kernel --------------------------------
def _ncad_fused_kernel(*refs, layer_meta, T):
    """Entire NCADNet forward for the fused batch (x ++ x_c), channels-last.

    refs (in order):
      z_ref                       : (N, T, C0)  fused input
      per layer i:
        w1_ref : (K*Cin, H)   b1_ref : (1, H)
        w2_ref : (K*H,  H)    b2_ref : (1, H)
        [wd_ref : (Cin, H)    bd_ref : (1, H)]  only if Cin != H
      o_ref                       : (N, H_last) last-time-step output
    """
    z_ref = refs[0]
    o_ref = refs[-1]

    z = z_ref[...].astype(jnp.float32)                       # (N, T, C0)
    N = z.shape[0]

    idx = 1
    for m in layer_meta:
        K, d, P = m["K"], m["d"], m["P"]
        Cin, H, has_ds = m["Cin"], m["H"], m["has_ds"]
        w1_ref, b1_ref, w2_ref, b2_ref = refs[idx:idx + 4]
        idx += 4
        if has_ds:
            wd_ref, bd_ref = refs[idx:idx + 2]
            idx += 2

        def causal_conv_relu(inp, w_ref, b_ref, C):
            # inp: (N, T, C). Dilated causal conv (torch Conv1d + Chomp) + bias
            # + ReLU, expressed as one im2col matmul on the MXU.
            if P > 0:
                zp = jnp.concatenate(
                    [jnp.zeros((N, P, C), jnp.float32), inp], axis=1)
            else:
                zp = inp
            if K > 1:
                cols = jnp.concatenate(
                    [zp[:, j * d:j * d + T, :] for j in range(K)], axis=-1)
            else:
                cols = zp
            y = jnp.dot(cols.reshape(N * T, K * C), w_ref[...],
                        preferred_element_type=jnp.float32) + b_ref[...]
            return jnp.maximum(y, 0.0).reshape(N, T, H)

        h1 = causal_conv_relu(z, w1_ref, b1_ref, Cin)   # dropout1: identity (eval)
        h2 = causal_conv_relu(h1, w2_ref, b2_ref, H)    # dropout2: identity (eval)

        # residual branch (1x1 conv downsample if channel counts differ)
        if has_ds:
            res = (jnp.dot(z.reshape(N * T, Cin), wd_ref[...],
                           preferred_element_type=jnp.float32)
                   + bd_ref[...]).reshape(N, T, H)
        else:
            res = z
        z = jnp.maximum(h2 + res, 0.0)

    # only the last time step is ever consumed by NCADNet.forward
    o_ref[...] = z[:, T - 1, :]


# ------------------------------ wrapper --------------------------------------
def ncadnet_forward(x, x_c, layers, *, kernel_size=2):
    """NCADNet.forward: returns (x_out[:, -1], xc_out[:, -1]); each (B, H)."""
    B, T, D = x.shape
    N = 2 * B
    z = jnp.concatenate([x, x_c], axis=0).astype(jnp.float32)  # (2B, T, D)

    args = [z]
    in_specs = [pl.BlockSpec((N, T, D), lambda i: (0, 0, 0))]
    layer_meta = []
    cin = D
    for layer in layers:
        p, d = layer["params"], layer["dilation"]
        K = kernel_size
        H = p["w1"].shape[-1]
        P = (K - 1) * d
        has_ds = cin != H
        layer_meta.append(dict(K=K, d=d, P=P, Cin=cin, H=H, has_ds=has_ds))

        # pre-flatten conv weights to the im2col layout (K*C, H)
        args += [p["w1"].reshape(K * cin, H), p["b1"],
                 p["w2"].reshape(K * H, H), p["b2"]]
        in_specs += [pl.BlockSpec((K * cin, H), lambda i: (0, 0)),
                     pl.BlockSpec((1, H), lambda i: (0, 0)),
                     pl.BlockSpec((K * H, H), lambda i: (0, 0)),
                     pl.BlockSpec((1, H), lambda i: (0, 0))]
        if has_ds:
            args += [p["wd"], p["bd"]]
            in_specs += [pl.BlockSpec((cin, H), lambda i: (0, 0)),
                         pl.BlockSpec((1, H), lambda i: (0, 0))]
        cin = H

    H_out = cin
    kernel = functools.partial(_ncad_fused_kernel,
                               layer_meta=tuple(layer_meta), T=T)

    out = pl.pallas_call(
        kernel,
        out_shape=jax.ShapeDtypeStruct((N, H_out), jnp.float32),
        grid=(1,),
        in_specs=in_specs,
        out_specs=pl.BlockSpec((N, H_out), lambda i: (0, 0)),
        compiler_params=pltpu.CompilerParams(
            dimension_semantics=("arbitrary",)),
    )(*args)
    # TODO(synk): for large B, tile the fused batch over a "parallel" grid axis
    # (with a T-halo of P rows if T grows) to shard across v7x's two TensorCores.
    return out[:B], out[B:]


def init_ncadnet_params(key, input_dim, hidden_dims=32, kernel_size=2):
    """Deterministic synthetic parameters (mirrors torch init scale 0.01)."""
    if isinstance(hidden_dims, int):
        hidden_dims = [hidden_dims]
    layers = []
    for i, h in enumerate(hidden_dims):
        cin = input_dim if i == 0 else hidden_dims[i - 1]
        key, k1, k2, k3, k4, k5, k6 = jax.random.split(key, 7)
        p = {
            "w1": 0.01 * jax.random.normal(k1, (kernel_size, cin, h), jnp.float32),
            "b1": 0.01 * jax.random.normal(k2, (1, h), jnp.float32),
            "w2": 0.01 * jax.random.normal(k3, (kernel_size, h, h), jnp.float32),
            "b2": 0.01 * jax.random.normal(k4, (1, h), jnp.float32),
        }
        if cin != h:
            p["wd"] = 0.01 * jax.random.normal(k5, (cin, h), jnp.float32)
            p["bd"] = 0.01 * jax.random.normal(k6, (1, h), jnp.float32)
        layers.append({"params": p, "dilation": 2 ** i})
    return layers


# ------------------------- pure-JAX reference --------------------------------
def _ref_block(x, p, kernel_size, dilation):
    K, P = kernel_size, (kernel_size - 1) * dilation
    B, T, Cin = x.shape
    xp = jnp.pad(x, ((0, 0), (P, 0), (0, 0)))
    h1 = sum(jnp.einsum("btc,ch->bth", xp[:, j * dilation:j * dilation + T, :],
                        p["w1"][j]) for j in range(K)) + p["b1"]
    h1 = jax.nn.relu(h1)
    h1p = jnp.pad(h1, ((0, 0), (P, 0), (0, 0)))
    h2 = sum(jnp.einsum("btc,ch->bth", h1p[:, j * dilation:j * dilation + T, :],
                        p["w2"][j]) for j in range(K)) + p["b2"]
    h2 = jax.nn.relu(h2)
    res = x if "wd" not in p else jnp.einsum("btc,ch->bth", x, p["wd"]) + p["bd"]
    return jax.nn.relu(h2 + res)


def ncadnet_ref(x, x_c, layers, *, kernel_size=2):
    def run(z):
        for layer in layers:
            z = _ref_block(z, layer["params"], kernel_size, layer["dilation"])
        return z
    return run(x)[:, -1], run(x_c)[:, -1]


# --------------------------------- main ---------------------------------------
if __name__ == "__main__":
    B, T, D, K = 2, 8, 4, 2          # batch, seq len, input_dim, kernel_size
    HIDDEN = [32, 32]                # two TCN blocks (dilations 1 and 2)

    key = jax.random.PRNGKey(0)
    kx, kc, kp = jax.random.split(key, 3)
    x = jax.random.normal(kx, (B, T, D), jnp.float32)
    x_c = jax.random.normal(kc, (B, T, D), jnp.float32)

    layers = init_ncadnet_params(kp, input_dim=D, hidden_dims=HIDDEN,
                                 kernel_size=K)

    x_out, xc_out = ncadnet_forward(x, x_c, layers, kernel_size=K)
    jax.block_until_ready((x_out, xc_out))

    x_ref, xc_ref = ncadnet_ref(x, x_c, layers, kernel_size=K)
    np.testing.assert_allclose(np.asarray(x_out), np.asarray(x_ref),
                               rtol=1e-5, atol=1e-5)
    np.testing.assert_allclose(np.asarray(xc_out), np.asarray(xc_ref),
                               rtol=1e-5, atol=1e-5)
    assert x_out.shape == (B, HIDDEN[-1]) and xc_out.shape == (B, HIDDEN[-1])

    print("KERNEL_OK")
</pallas_src>

<mosaic_0001>
module attributes {stable_mosaic.version = 11 : i64} {
  func.func @_ncad_fused_kernel(%arg0: i32, %arg1: memref<4x8x4xf32, #tpu.memory_space<vmem>>, %arg2: memref<8x32xf32, #tpu.memory_space<vmem>>, %arg3: memref<1x32xf32, #tpu.memory_space<vmem>>, %arg4: memref<64x32xf32, #tpu.memory_space<vmem>>, %arg5: memref<1x32xf32, #tpu.memory_space<vmem>>, %arg6: memref<4x32xf32, #tpu.memory_space<vmem>>, %arg7: memref<1x32xf32, #tpu.memory_space<vmem>>, %arg8: memref<64x32xf32, #tpu.memory_space<vmem>>, %arg9: memref<1x32xf32, #tpu.memory_space<vmem>>, %arg10: memref<64x32xf32, #tpu.memory_space<vmem>>, %arg11: memref<1x32xf32, #tpu.memory_space<vmem>>, %arg12: memref<4x32xf32, #tpu.memory_space<vmem>>) attributes {dimension_semantics = [#tpu.dimension_semantics<arbitrary>], iteration_bounds = array<i64: 1>, scalar_prefetch = 0 : i64, scratch_operands = 0 : i64, tpu.core_type = #tpu.core_type<tc>, window_params = [{pipeline_mode = #tpu.pipeline_mode<synchronous>, transform_indices = @transform_0, window_bounds = array<i64: 4, 8, 4>}, {pipeline_mode = #tpu.pipeline_mode<synchronous>, transform_indices = @transform_1, window_bounds = array<i64: 8, 32>}, {pipeline_mode = #tpu.pipeline_mode<synchronous>, transform_indices = @transform_2, window_bounds = array<i64: 1, 32>}, {pipeline_mode = #tpu.pipeline_mode<synchronous>, transform_indices = @transform_3, window_bounds = array<i64: 64, 32>}, {pipeline_mode = #tpu.pipeline_mode<synchronous>, transform_indices = @transform_4, window_bounds = array<i64: 1, 32>}, {pipeline_mode = #tpu.pipeline_mode<synchronous>, transform_indices = @transform_5, window_bounds = array<i64: 4, 32>}, {pipeline_mode = #tpu.pipeline_mode<synchronous>, transform_indices = @transform_6, window_bounds = array<i64: 1, 32>}, {pipeline_mode = #tpu.pipeline_mode<synchronous>, transform_indices = @transform_7, window_bounds = array<i64: 64, 32>}, {pipeline_mode = #tpu.pipeline_mode<synchronous>, transform_indices = @transform_8, window_bounds = array<i64: 1, 32>}, {pipeline_mode = #tpu.pipeline_mode<synchronous>, transform_indices = @transform_9, window_bounds = array<i64: 64, 32>}, {pipeline_mode = #tpu.pipeline_mode<synchronous>, transform_indices = @transform_10, window_bounds = array<i64: 1, 32>}, {pipeline_mode = #tpu.pipeline_mode<synchronous>, transform_indices = @transform_11, window_bounds = array<i64: 4, 32>}]} {
    %c0 = arith.constant 0 : index
    %c0_0 = arith.constant 0 : index
    %c0_1 = arith.constant 0 : index
    %0 = vector.load %arg1[%c0, %c0_0, %c0_1] : memref<4x8x4xf32, #tpu.memory_space<vmem>>, vector<4x8x4xf32>
    %cst = arith.constant 0.000000e+00 : f32
    %1 = vector.broadcast %cst : f32 to vector<4x1x4xf32>
    %2 = tpu.concatenate %1, %0 in 1 : vector<4x1x4xf32>, vector<4x8x4xf32> -> vector<4x9x4xf32>
    %3 = vector.extract_strided_slice %2 {offsets = [0, 0, 0], sizes = [4, 8, 4], strides = [1, 1, 1]} : vector<4x9x4xf32> to vector<4x8x4xf32>
    %4 = vector.extract_strided_slice %2 {offsets = [0, 1, 0], sizes = [4, 8, 4], strides = [1, 1, 1]} : vector<4x9x4xf32> to vector<4x8x4xf32>
    %5 = tpu.concatenate %3, %4 in 2 : vector<4x8x4xf32>, vector<4x8x4xf32> -> vector<4x8x8xf32>
    %6 = vector.shape_cast %5 : vector<4x8x8xf32> to vector<32x8xf32>
    %c0_2 = arith.constant 0 : index
    %c0_3 = arith.constant 0 : index
    %7 = vector.load %arg2[%c0_2, %c0_3] : memref<8x32xf32, #tpu.memory_space<vmem>>, vector<8x32xf32>
    %cst_4 = arith.constant dense<0.000000e+00> : vector<32x32xf32>
    %8 = tpu.matmul %6, %7, %cst_4 {dimension_numbers = #tpu.dot_dimension_numbers<[1], [0], [0], [1], [0, 0, 1, 1], [], []>} : vector<32x8xf32>, vector<8x32xf32>, vector<32x32xf32> -> vector<32x32xf32>
    %c0_5 = arith.constant 0 : index
    %c0_6 = arith.constant 0 : index
    %9 = vector.load %arg3[%c0_5, %c0_6] : memref<1x32xf32, #tpu.memory_space<vmem>>, vector<1x32xf32>
    %10 = vector.broadcast %9 : vector<1x32xf32> to vector<32x32xf32>
    %11 = arith.addf %8, %10 : vector<32x32xf32>
    %cst_7 = arith.constant 0.000000e+00 : f32
    %12 = vector.broadcast %cst_7 : f32 to vector<32x32xf32>
    %13 = arith.maximumf %11, %12 : vector<32x32xf32>
    %14 = vector.shape_cast %13 : vector<32x32xf32> to vector<4x8x32xf32>
    %cst_8 = arith.constant 0.000000e+00 : f32
    %15 = vector.broadcast %cst_8 : f32 to vector<4x1x32xf32>
    %16 = tpu.concatenate %15, %14 in 1 : vector<4x1x32xf32>, vector<4x8x32xf32> -> vector<4x9x32xf32>
    %17 = vector.extract_strided_slice %16 {offsets = [0, 0, 0], sizes = [4, 8, 32], strides = [1, 1, 1]} : vector<4x9x32xf32> to vector<4x8x32xf32>
    %18 = vector.extract_strided_slice %16 {offsets = [0, 1, 0], sizes = [4, 8, 32], strides = [1, 1, 1]} : vector<4x9x32xf32> to vector<4x8x32xf32>
    %19 = tpu.concatenate %17, %18 in 2 : vector<4x8x32xf32>, vector<4x8x32xf32> -> vector<4x8x64xf32>
    %20 = vector.shape_cast %19 : vector<4x8x64xf32> to vector<32x64xf32>
    %c0_9 = arith.constant 0 : index
    %c0_10 = arith.constant 0 : index
    %21 = vector.load %arg4[%c0_9, %c0_10] : memref<64x32xf32, #tpu.memory_space<vmem>>, vector<64x32xf32>
    %cst_11 = arith.constant dense<0.000000e+00> : vector<32x32xf32>
    %22 = tpu.matmul %20, %21, %cst_11 {dimension_numbers = #tpu.dot_dimension_numbers<[1], [0], [0], [1], [0, 0, 1, 1], [], []>} : vector<32x64xf32>, vector<64x32xf32>, vector<32x32xf32> -> vector<32x32xf32>
    %c0_12 = arith.constant 0 : index
    %c0_13 = arith.constant 0 : index
    %23 = vector.load %arg5[%c0_12, %c0_13] : memref<1x32xf32, #tpu.memory_space<vmem>>, vector<1x32xf32>
    %24 = vector.broadcast %23 : vector<1x32xf32> to vector<32x32xf32>
    %25 = arith.addf %22, %24 : vector<32x32xf32>
    %cst_14 = arith.constant 0.000000e+00 : f32
    %26 = vector.broadcast %cst_14 : f32 to vector<32x32xf32>
    %27 = arith.maximumf %25, %26 : vector<32x32xf32>
    %28 = vector.shape_cast %27 : vector<32x32xf32> to vector<4x8x32xf32>
    %29 = vector.shape_cast %0 : vector<4x8x4xf32> to vector<32x4xf32>
    %c0_15 = arith.constant 0 : index
    %c0_16 = arith.constant 0 : index
    %30 = vector.load %arg6[%c0_15, %c0_16] : memref<4x32xf32, #tpu.memory_space<vmem>>, vector<4x32xf32>
    %cst_17 = arith.constant dense<0.000000e+00> : vector<32x32xf32>
    %31 = tpu.matmul %29, %30, %cst_17 {dimension_numbers = #tpu.dot_dimension_numbers<[1], [0], [0], [1], [0, 0, 1, 1], [], []>} : vector<32x4xf32>, vector<4x32xf32>, vector<32x32xf32> -> vector<32x32xf32>
    %c0_18 = arith.constant 0 : index
    %c0_19 = arith.constant 0 : index
    %32 = vector.load %arg7[%c0_18, %c0_19] : memref<1x32xf32, #tpu.memory_space<vmem>>, vector<1x32xf32>
    %33 = vector.broadcast %32 : vector<1x32xf32> to vector<32x32xf32>
    %34 = arith.addf %31, %33 : vector<32x32xf32>
    %35 = vector.shape_cast %34 : vector<32x32xf32> to vector<4x8x32xf32>
    %36 = arith.addf %28, %35 : vector<4x8x32xf32>
    %cst_20 = arith.constant 0.000000e+00 : f32
    %37 = vector.broadcast %cst_20 : f32 to vector<4x8x32xf32>
    %38 = arith.maximumf %36, %37 : vector<4x8x32xf32>
    %cst_21 = arith.constant 0.000000e+00 : f32
    %39 = vector.broadcast %cst_21 : f32 to vector<4x2x32xf32>
    %40 = tpu.concatenate %39, %38 in 1 : vector<4x2x32xf32>, vector<4x8x32xf32> -> vector<4x10x32xf32>
    %41 = vector.extract_strided_slice %40 {offsets = [0, 0, 0], sizes = [4, 8, 32], strides = [1, 1, 1]} : vector<4x10x32xf32> to vector<4x8x32xf32>
    %42 = vector.extract_strided_slice %40 {offsets = [0, 2, 0], sizes = [4, 8, 32], strides = [1, 1, 1]} : vector<4x10x32xf32> to vector<4x8x32xf32>
    %43 = tpu.concatenate %41, %42 in 2 : vector<4x8x32xf32>, vector<4x8x32xf32> -> vector<4x8x64xf32>
    %44 = vector.shape_cast %43 : vector<4x8x64xf32> to vector<32x64xf32>
    %c0_22 = arith.constant 0 : index
    %c0_23 = arith.constant 0 : index
    %45 = vector.load %arg8[%c0_22, %c0_23] : memref<64x32xf32, #tpu.memory_space<vmem>>, vector<64x32xf32>
    %cst_24 = arith.constant dense<0.000000e+00> : vector<32x32xf32>
    %46 = tpu.matmul %44, %45, %cst_24 {dimension_numbers = #tpu.dot_dimension_numbers<[1], [0], [0], [1], [0, 0, 1, 1], [], []>} : vector<32x64xf32>, vector<64x32xf32>, vector<32x32xf32> -> vector<32x32xf32>
    %c0_25 = arith.constant 0 : index
    %c0_26 = arith.constant 0 : index
    %47 = vector.load %arg9[%c0_25, %c0_26] : memref<1x32xf32, #tpu.memory_space<vmem>>, vector<1x32xf32>
    %48 = vector.broadcast %47 : vector<1x32xf32> to vector<32x32xf32>
    %49 = arith.addf %46, %48 : vector<32x32xf32>
    %cst_27 = arith.constant 0.000000e+00 : f32
    %50 = vector.broadcast %cst_27 : f32 to vector<32x32xf32>
    %51 = arith.maximumf %49, %50 : vector<32x32xf32>
    %52 = vector.shape_cast %51 : vector<32x32xf32> to vector<4x8x32xf32>
    %cst_28 = arith.constant 0.000000e+00 : f32
    %53 = vector.broadcast %cst_28 : f32 to vector<4x2x32xf32>
    %54 = tpu.concatenate %53, %52 in 1 : vector<4x2x32xf32>, vector<4x8x32xf32> -> vector<4x10x32xf32>
    %55 = vector.extract_strided_slice %54 {offsets = [0, 0, 0], sizes = [4, 8, 32], strides = [1, 1, 1]} : vector<4x10x32xf32> to vector<4x8x32xf32>
    %56 = vector.extract_strided_slice %54 {offsets = [0, 2, 0], sizes = [4, 8, 32], strides = [1, 1, 1]} : vector<4x10x32xf32> to vector<4x8x32xf32>
    %57 = tpu.concatenate %55, %56 in 2 : vector<4x8x32xf32>, vector<4x8x32xf32> -> vector<4x8x64xf32>
    %58 = vector.shape_cast %57 : vector<4x8x64xf32> to vector<32x64xf32>
    %c0_29 = arith.constant 0 : index
    %c0_30 = arith.constant 0 : index
    %59 = vector.load %arg10[%c0_29, %c0_30] : memref<64x32xf32, #tpu.memory_space<vmem>>, vector<64x32xf32>
    %cst_31 = arith.constant dense<0.000000e+00> : vector<32x32xf32>
    %60 = tpu.matmul %58, %59, %cst_31 {dimension_numbers = #tpu.dot_dimension_numbers<[1], [0], [0], [1], [0, 0, 1, 1], [], []>} : vector<32x64xf32>, vector<64x32xf32>, vector<32x32xf32> -> vector<32x32xf32>
    %c0_32 = arith.constant 0 : index
    %c0_33 = arith.constant 0 : index
    %61 = vector.load %arg11[%c0_32, %c0_33] : memref<1x32xf32, #tpu.memory_space<vmem>>, vector<1x32xf32>
    %62 = vector.broadcast %61 : vector<1x32xf32> to vector<32x32xf32>
    %63 = arith.addf %60, %62 : vector<32x32xf32>
    %cst_34 = arith.constant 0.000000e+00 : f32
    %64 = vector.broadcast %cst_34 : f32 to vector<32x32xf32>
    %65 = arith.maximumf %63, %64 : vector<32x32xf32>
    %66 = vector.shape_cast %65 : vector<32x32xf32> to vector<4x8x32xf32>
    %67 = arith.addf %66, %38 : vector<4x8x32xf32>
    %cst_35 = arith.constant 0.000000e+00 : f32
    %68 = vector.broadcast %cst_35 : f32 to vector<4x8x32xf32>
    %69 = arith.maximumf %67, %68 : vector<4x8x32xf32>
    %70 = vector.extract_strided_slice %69 {offsets = [0, 7, 0], sizes = [4, 1, 32], strides = [1, 1, 1]} : vector<4x8x32xf32> to vector<4x1x32xf32>
    %71 = vector.shape_cast %70 : vector<4x1x32xf32> to vector<4x32xf32>
    %c0_36 = arith.constant 0 : index
    %c0_37 = arith.constant 0 : index
    %72 = vector.load %arg12[%c0_36, %c0_37] : memref<4x32xf32, #tpu.memory_space<vmem>>, vector<4x32xf32>
    tpu.vector_store %arg12[%c0_36, %c0_37], %71 {strides = array<i32>} : memref<4x32xf32, #tpu.memory_space<vmem>>, vector<4x32xf32>,
    return
  }
  func.func @transform_0(%arg0: i32) -> (i32, i32, i32) {
    %c0_i32 = arith.constant 0 : i32
    %c0_i32_0 = arith.constant 0 : i32
    %c0_i32_1 = arith.constant 0 : i32
    %c0_i32_2 = arith.constant 0 : i32
    return %c0_i32, %c0_i32_0, %c0_i32_1 : i32, i32, i32
  }
  func.func @transform_1(%arg0: i32) -> (i32, i32) {
    %c0_i32 = arith.constant 0 : i32
    %c0_i32_0 = arith.constant 0 : i32
    %c0_i32_1 = arith.constant 0 : i32
    return %c0_i32, %c0_i32_0 : i32, i32
  }
  func.func @transform_2(%arg0: i32) -> (i32, i32) {
    %c0_i32 = arith.constant 0 : i32
    %c0_i32_0 = arith.constant 0 : i32
    %c0_i32_1 = arith.constant 0 : i32
    return %c0_i32, %c0_i32_0 : i32, i32
  }
  func.func @transform_3(%arg0: i32) -> (i32, i32) {
    %c0_i32 = arith.constant 0 : i32
    %c0_i32_0 = arith.constant 0 : i32
    %c0_i32_1 = arith.constant 0 : i32
    return %c0_i32, %c0_i32_0 : i32, i32
  }
  func.func @transform_4(%arg0: i32) -> (i32, i32) {
    %c0_i32 = arith.constant 0 : i32
    %c0_i32_0 = arith.constant 0 : i32
    %c0_i32_1 = arith.constant 0 : i32
    return %c0_i32, %c0_i32_0 : i32, i32
  }
  func.func @transform_5(%arg0: i32) -> (i32, i32) {
    %c0_i32 = arith.constant 0 : i32
    %c0_i32_0 = arith.constant 0 : i32
    %c0_i32_1 = arith.constant 0 : i32
    return %c0_i32, %c0_i32_0 : i32, i32
  }
  func.func @transform_6(%arg0: i32) -> (i32, i32) {
    %c0_i32 = arith.constant 0 : i32
    %c0_i32_0 = arith.constant 0 : i32
    %c0_i32_1 = arith.constant 0 : i32
    return %c0_i32, %c0_i32_0 : i32, i32
  }
  func.func @transform_7(%arg0: i32) -> (i32, i32) {
    %c0_i32 = arith.constant 0 : i32
    %c0_i32_0 = arith.constant 0 : i32
    %c0_i32_1 = arith.constant 0 : i32
    return %c0_i32, %c0_i32_0 : i32, i32
  }
  func.func @transform_8(%arg0: i32) -> (i32, i32) {
    %c0_i32 = arith.constant 0 : i32
    %c0_i32_0 = arith.constant 0 : i32
    %c0_i32_1 = arith.constant 0 : i32
    return %c0_i32, %c0_i32_0 : i32, i32
  }
  func.func @transform_9(%arg0: i32) -> (i32, i32) {
    %c0_i32 = arith.constant 0 : i32
    %c0_i32_0 = arith.constant 0 : i32
    %c0_i32_1 = arith.constant 0 : i32
    return %c0_i32, %c0_i32_0 : i32, i32
  }
  func.func @transform_10(%arg0: i32) -> (i32, i32) {
    %c0_i32 = arith.constant 0 : i32
    %c0_i32_0 = arith.constant 0 : i32
    %c0_i32_1 = arith.constant 0 : i32
    return %c0_i32, %c0_i32_0 : i32, i32
  }
  func.func @transform_11(%arg0: i32) -> (i32, i32) {
    %c0_i32 = arith.constant 0 : i32
    %c0_i32_0 = arith.constant 0 : i32
    %c0_i32_1 = arith.constant 0 : i32
    return %c0_i32, %c0_i32_0 : i32, i32
  }
}

</mosaic_0001>

<bundles_post_ra>
// kernel: tpu_custom_call.1
= control target key start
LH: loop header
LB: loop body
LE: loop exit
PB: predicated region body
PF: predicated region fallthrough
CT: control target
= control target key end

     0   :  { %vm55_vm0 = vcmask 1040384   ;;  %vm64_vm1 = vcmask 1046528   ;;  %s1377_s0 = inlined_call_operand.vmem [shape: f32[4,8,4], index: 0, kind: input, shape index: {}]   ;;  %s1378_s1 = inlined_call_operand.vmem [shape: f32[8,32], index: 1, kind: input, shape index: {}]   ;;  %s1379_s2 = inlined_call_operand.vmem [shape: f32[1,32], index: 2, kind: input, shape index: {}]   ;;  %s1380_s3 = inlined_call_operand.vmem [shape: f32[64,32], index: 3, kind: input, shape index: {}]   ;;  %s1381_s4 = inlined_call_operand.vmem [shape: f32[1,32], index: 4, kind: input, shape index: {}]   ;;  %s1382_s5 = inlined_call_operand.vmem [shape: f32[4,32], index: 5, kind: input, shape index: {}]   ;;  %s1383_s6 = inlined_call_operand.vmem [shape: f32[1,32], index: 6, kind: input, shape index: {}]   ;;  %s1384_s7 = inlined_call_operand.vmem [shape: f32[64,32], index: 7, kind: input, shape index: {}]   ;;  %s1385_s8 = inlined_call_operand.vmem [shape: f32[1,32], index: 8, kind: input, shape index: {}]   ;;  %s1386_s9 = inlined_call_operand.vmem [shape: f32[64,32], index: 9, kind: input, shape index: {}]   ;;  %s1387_s10 = inlined_call_operand.vmem [shape: f32[1,32], index: 10, kind: input, shape index: {}]   ;;  %s1388_s11 = inlined_call_operand.hbm [shape: f32[4,32], index: 11, kind: output, shape index: {}]  }
   0x1   :  { %v39_v0 = vld [vmem:[%s1377_s0] sm:$0xff]  ;;  %v1150_v1 = vld [vmem:[%s1377_s0 + $0x10] sm:$0xff]  ;;  %v1155_v2 = vld [vmem:[%s1377_s0 + $0x8] sm:$0xff] }
   0x2   :  { %v47_v3 = vrot.slane %v39_v0, 7  ;;  %v49_v4 = vrot.slane %v1150_v1, 7  ;;  %v48_v5 = vrot.slane %v1155_v2, 7  ;;  %v1162_v6 = vld [vmem:[%s1377_s0 + $0x18] sm:$0xff]  ;;  %v94_v7 = vld [vmem:[%s1378_s1] sm:$0xff] }
   0x3   :  { %v50_v8 = vrot.slane %v1162_v6, 7  ;;  %924 = vmatprep.subr.mxu0 %v94_v7 }
   0x4   :  { %16 = vsyncpa [#allocation3], 0  ;;  %v56_v9 = vsel %vm55_vm0, 0.0, %v47_v3  ;;  %v66_v10 = vrot.slane %v47_v3, 1  ;;  %v58_v11 = vsel %vm55_vm0, 0.0, %v49_v4  ;;  %v72_v12 = vrot.slane %v49_v4, 1  ;;  %925 = vmatpush3.msra.mxu0 %v94_v7 }
   0x5   :  { %v65_v13 = vrot.slane %v56_v9, 1  ;;  %v71_v14 = vrot.slane %v58_v11, 1  ;;  %v57_v15 = vsel %vm55_vm0, 0.0, %v48_v5  ;;  %v69_v16 = vrot.slane %v48_v5, 1  ;;  %s1081_s0 = smov 4   ;;  %v253_v33 = vld [vmem:[%s1380_s3] sm:$0xff] }
   0x6   :  { %v68_v17 = vrot.slane %v57_v15, 1  ;;  %v59_v18 = vsel %vm55_vm0, 0.0, %v50_v8  ;;  %v75_v19 = vrot.slane %v50_v8, 1  ;;  %vm89_vm2 = vcmask 31744   ;;  %v254_v34 = vld [vmem:[%s1380_s3 + $0x8] sm:$0xff]  ;;  %v255_v35 = vld [vmem:[%s1380_s3 + $0x10] sm:$0xff] }
   0x7   :  { %v67_v20 = vsel %vm64_vm1, %v65_v13, %v66_v10  ;;  %v73_v21 = vsel %vm64_vm1, %v71_v14, %v72_v12  ;;  %v74_v22 = vrot.slane %v59_v18, 1  ;;  %vm102_vm3 = vcmask 64512   ;;  %v256_v37 = vld [vmem:[%s1380_s3 + $0x18] sm:$0xff]  ;;  %v257_v39 = vld [vmem:[%s1380_s3 + $0x20] sm:$0xff]  ;;  %v258_v40 = vld [vmem:[%s1380_s3 + $0x28] sm:$0xff] }
   0x8   :  { %77 = vrot.lane.b32.xlu0 %v67_v20, %s1081_s0  ;;  %81 = vrot.lane.b32.xlu1 %v73_v21, %s1081_s0  ;;  %v70_v23 = vsel %vm64_vm1, %v68_v17, %v69_v16  ;;  %vm386_vm4 = vcmask 1043456   ;;  %v1006_v36 = vpack.c.bf16 %v254_v34, %v253_v33  ;;  %v1010_v38 = vpack.c.bf16 %v256_v37, %v255_v35  ;;  %v370_v41 = vld [vmem:[%s1382_s5] sm:$0xf]  ;;  %v259_v43 = vld [vmem:[%s1380_s3 + $0x30] sm:$0xff] }
   0x9   :  { %v76_v24 = vsel %vm64_vm1, %v74_v22, %v75_v19  ;;  %954 = vmatprep.subr.msk.mxu0 %vm386_vm4, %v370_v41  ;;  %v1014_v42 = vpack.c.bf16 %v258_v40, %v257_v39  ;;  %v260_v44 = vld [vmem:[%s1380_s3 + $0x38] sm:$0xff]  ;;  %v852_v46 = vld [vmem:[%s1379_s2] ss:$0 sm:$0xff]  ;;  %s1082_s2 = smov 32   ;;  %vm248_vm5 = vcmask 261120   ;;  %vm268_vm6 = vcmask 523264  }
   0xa   :  { %1007 = vmatprep.subr.bf16.mxu1 %v1006_v36  ;;  %v1018_v45 = vpack.c.bf16 %v260_v44, %v259_v43  ;;  %v537_v33 = vld [vmem:[%s1384_s7 + $0x20] sm:$0xff]  ;;  %v538_v34 = vld [vmem:[%s1384_s7 + $0x28] sm:$0xff]  ;;  %v540_v37 = vld [vmem:[%s1384_s7 + $0x38] sm:$0xff]  ;;  %vm495_vm7 = vcmask 1041408   ;;  %vm504_vm8 = vcmask 1045504   ;;  %vm834_vm9 = vcmask 261127  }
   0xb   :  { %1009 = vmatpush3.bf16.msra.mxu1 %v1006_v36  ;;  %v1030_v35 = vpack.c.bf16 %v538_v34, %v537_v33  ;;  %v539_v36 = vld [vmem:[%s1384_s7 + $0x30] sm:$0xff]  ;;  %v857_v39 = vld [vmem:[%s1381_s4] ss:$0 sm:$0xff]  ;;  %v700_v33 = vld [vmem:[%s1386_s9 + $0x18] sm:$0xff]  ;;  %vm827_vm10 = vcmask 1041409   ;;  %vm830_vm11 = vcmask 1042434  }
   0xc   :  { %79 = vrot.lane.b32.xlu0 %v70_v23, %s1081_s0  ;;  %83 = vrot.lane.b32.xlu1 %v76_v24, %s1081_s0  ;;  %v862_v40 = vld [vmem:[%s1383_s6] ss:$0 sm:$0xff]  ;;  %vm836_vm12 = vcmask 256000  }
   0xd   :  { %1011 = vmatprep.subr.bf16.mxu1 %v1010_v38 }
   0xf   :  { %1013 = vmatpush3.bf16.msra.mxu1 %v1010_v38  ;;  %v1034_v38 = vpack.c.bf16 %v540_v37, %v539_v36  ;;  %v702_v36 = vld [vmem:[%s1386_s9 + $0x28] sm:$0xff] }
  0x10   :  { %1015 = vmatprep.subr.bf16.mxu1 %v1014_v42 }
  0x13   :  { %1017 = vmatpush3.bf16.msra.mxu1 %v1014_v42 }
  0x14   :  { %1019 = vmatprep.subr.bf16.mxu1 %v1018_v45 }
  0x17   :  { %1021 = vmatpush3.bf16.msra.mxu1 %v1018_v45 }
  0x7a   :  { %v78_v25 = vpop.permute.xlu0 %77  ;;  %v82_v26 = vpop.permute.xlu1 %81 }
  0x7b   :  { %v90_v27 = vsel %vm89_vm2, %v56_v9, %v78_v25  ;;  %v92_v28 = vsel %vm89_vm2, %v58_v11, %v82_v26 }
  0x7c   :  { %926 = vmatprep.mubr.msk.f32.mxu0 %vm102_vm3, %v90_v27  ;;  %v533_v27 = vld [vmem:[%s1384_s7] sm:$0xff] }
  0x7e   :  { %v80_v29 = vpop.permute.xlu0 %79  ;;  %v84_v30 = vpop.permute.xlu1 %83 }
  0x7f   :  { %v91_v31 = vsel %vm89_vm2, %v57_v15, %v80_v29  ;;  %v93_v32 = vsel %vm89_vm2, %v59_v18, %v84_v30  ;;  %v535_v29 = vld [vmem:[%s1384_s7 + $0x10] sm:$0xff] }
  0x80   :  { %927 = vmatmul.mubr.msk.f32.vlgmr.msra.gmra.mrb[0].mxu0 %vm102_vm3, %v91_v31  ;;  %v536_v31 = vld [vmem:[%s1384_s7 + $0x18] sm:$0xff] }
  0x81   :  { %929 = vmatprep.mubr.msk.f32.mxu0 %vm102_vm3, %v92_v28  ;;  %955 = vmatpush3.msk.msra.mxu0 %vm386_vm4, %v370_v41  ;;  %v534_v28 = vld [vmem:[%s1384_s7 + $0x8] sm:$0xff] }
  0x82   :  { %v1022_v30 = vpack.c.bf16 %v534_v28, %v533_v27 }
  0x84   :  { %930 = vmatmul.mubr.msk.f32.gmra.mrb[2].mxu0 %vm102_vm3, %v93_v32  ;;  %v1026_v32 = vpack.c.bf16 %v536_v31, %v535_v29  ;;  %1023 = vmatprep.subr.bf16.mxu0 %v1022_v30  ;;  %v697_v29 = vld [vmem:[%s1386_s9] sm:$0xff]  ;;  %v699_v31 = vld [vmem:[%s1386_s9 + $0x10] sm:$0xff] }
  0x85   :  { %956 = vmatprep.mubr.msk.f32.mxu0 %vm89_vm2, %v39_v0  ;;  %v1042_v34 = vpack.c.bf16 %v700_v33, %v699_v31 }
  0x88   :  { %957 = vmatmul.mubr.msk.f32.vlgmr.msra.gmra.mrb[4].mxu0 %vm89_vm2, %v1155_v2 }
  0x89   :  { %959 = vmatprep.mubr.msk.f32.mxu0 %vm89_vm2, %v1150_v1  ;;  %1025 = vmatpush3.bf16.msra.mxu0 %v1022_v30  ;;  %v698_v30 = vld [vmem:[%s1386_s9 + $0x8] sm:$0xff] }
  0x8a   :  { %1027 = vmatprep.subr.bf16.mxu0 %v1026_v32 }
  0x8c   :  { %960 = vmatmul.mubr.msk.f32.gmra.mrb[6].mxu0 %vm89_vm2, %v1162_v6 }
  0x8d   :  { %1029 = vmatpush3.bf16.msra.mxu0 %v1026_v32  ;;  %v1038_v32 = vpack.c.bf16 %v698_v30, %v697_v29 }
  0x8e   :  { %1031 = vmatprep.subr.bf16.mxu0 %v1030_v35 }
  0x8f   :  { %1039 = vmatprep.subr.bf16.mxu1 %v1038_v32 }
  0x91   :  { %1033 = vmatpush3.bf16.msra.mxu0 %v1030_v35  ;;  %v701_v35 = vld [vmem:[%s1386_s9 + $0x20] sm:$0xff] }
  0x92   :  { %1035 = vmatprep.subr.bf16.mxu0 %v1034_v38  ;;  %v1046_v37 = vpack.c.bf16 %v702_v36, %v701_v35 }
  0x95   :  { %1037 = vmatpush3.bf16.msra.mxu0 %v1034_v38  ;;  %v703_v38 = vld [vmem:[%s1386_s9 + $0x30] sm:$0xff] }
 0x153   :  { %v928_v47 = vpop.f32.mrb[0].mxu0 }
 0x154   :  { %v187_v48 = vadd.f32 %v928_v47, %v852_v46  ;;  %v181_v49 = vpop.f32.mrb[1].mxu0 }
 0x155   :  { %v182_v50 = vadd.f32 %v852_v46, %v181_v49 }
 0x156   :  { %v201_v51 = vmax.f32 %v187_v48, 0.0 }
 0x157   :  { %v200_v52 = vmax.f32 %v182_v50, 0.0  ;;  %v931_v53 = vpop.f32.mrb[2].mxu0 }
 0x158   :  { %v209_v54 = vrot.slane %v201_v51, 7  ;;  %v197_v55 = vadd.f32 %v931_v53, %v852_v46  ;;  %v191_v56 = vpop.f32.mrb[3].mxu0 }
 0x159   :  { %v208_v57 = vrot.slane %v200_v52, 7  ;;  %v192_v58 = vadd.f32 %v852_v46, %v191_v56 }
 0x15a   :  { %v217_v59 = vsel %vm55_vm0, 0.0, %v209_v54  ;;  %v228_v60 = vrot.slane %v209_v54, 1  ;;  %v203_v61 = vmax.f32 %v197_v55, 0.0 }
 0x15b   :  { %v227_v62 = vrot.slane %v217_v59, 1  ;;  %v216_v63 = vsel %vm55_vm0, 0.0, %v208_v57  ;;  %v225_v0 = vrot.slane %v208_v57, 1  ;;  %v202_v1 = vmax.f32 %v192_v58, 0.0  ;;  %v958_v23 = vpop.f32.mrb[4].mxu0 }
 0x15c   :  { %v224_v2 = vrot.slane %v216_v63, 1  ;;  %v211_v3 = vrot.slane %v203_v61, 7  ;;  %v456_v24 = vpop.f32.mrb[5].mxu0  ;;  %v462_v44 = vadd.f32 %v958_v23, %v862_v40 }
 0x15d   :  { %v210_v4 = vrot.slane %v202_v1, 7  ;;  %v229_v5 = vsel %vm64_vm1, %v227_v62, %v228_v60  ;;  %v457_v46 = vadd.f32 %v862_v40, %v456_v24 }
 0x15e   :  { %v219_v6 = vsel %vm55_vm0, 0.0, %v211_v3  ;;  %v234_v7 = vrot.slane %v211_v3, 1  ;;  %238 = vrot.lane.b32.xlu1 %v229_v5, %s1082_s2  ;;  %v226_v8 = vsel %vm64_vm1, %v224_v2, %v225_v0 }
 0x15f   :  { %v233_v9 = vrot.slane %v219_v6, 1  ;;  %v218_v10 = vsel %vm55_vm0, 0.0, %v210_v4  ;;  %v231_v11 = vrot.slane %v210_v4, 1  ;;  %236 = vrot.lane.b32.xlu0 %v226_v8, %s1082_s2  ;;  %v961_v25 = vpop.f32.mrb[6].mxu0 }
 0x160   :  { %v230_v12 = vrot.slane %v218_v10, 1  ;;  %v466_v26 = vpop.f32.mrb[7].mxu0  ;;  %v472_v53 = vadd.f32 %v961_v25, %v862_v40 }
 0x161   :  { %v235_v13 = vsel %vm64_vm1, %v233_v9, %v234_v7  ;;  %v467_v56 = vadd.f32 %v862_v40, %v466_v26 }
 0x162   :  { %242 = vrot.lane.b32.xlu1 %v235_v13, %s1082_s2  ;;  %v232_v14 = vsel %vm64_vm1, %v230_v12, %v231_v11 }
 0x163   :  { %240 = vrot.lane.b32.xlu0 %v232_v14, %s1082_s2 }
 0x1d0   :  { %v239_v15 = vpop.permute.xlu1 %238 }
 0x1d1   :  { %v237_v16 = vpop.permute.xlu0 %236  ;;  %v250_v18 = vsel %vm248_vm5, %v217_v59, %v239_v15 }
 0x1d2   :  { %v249_v17 = vsel %vm248_vm5, %v216_v63, %v237_v16 }
 0x1d3   :  { %948 = vmatprep.mubr.msk.f32.mxu1 %vm268_vm6, %v249_v17 }
 0x1d4   :  { %v243_v19 = vpop.permute.xlu1 %242  ;;  %949 = vmatmul.mubr.msk.f32.vlgmr.msra.gmra.mrb[0].mxu1 %vm268_vm6, %v250_v18 }
 0x1d5   :  { %v241_v20 = vpop.permute.xlu0 %240  ;;  %v252_v22 = vsel %vm248_vm5, %v219_v6, %v243_v19  ;;  %1041 = vmatpush3.bf16.msra.mxu1 %v1038_v32 }
 0x1d6   :  { %v251_v21 = vsel %vm248_vm5, %v218_v10, %v241_v20  ;;  %1043 = vmatprep.subr.bf16.mxu1 %v1042_v34 }
 0x1d7   :  { %951 = vmatprep.mubr.msk.f32.mxu1 %vm268_vm6, %v251_v21 }
 0x1d8   :  { %952 = vmatmul.mubr.msk.f32.gmra.mrb[2].mxu1 %vm268_vm6, %v252_v22 }
 0x1d9   :  { %1045 = vmatpush3.bf16.msra.mxu1 %v1042_v34 }
 0x1da   :  { %1047 = vmatprep.subr.bf16.mxu1 %v1046_v37 }
 0x1dd   :  { %1049 = vmatpush3.bf16.msra.mxu1 %v1046_v37 }
 0x2a7   :  { %v950_v41 = vpop.f32.mrb[0].mxu1 }
 0x2a8   :  { %v353_v42 = vadd.f32 %v950_v41, %v857_v39  ;;  %v347_v43 = vpop.f32.mrb[1].mxu1  ;;  %v868_v41 = vld [vmem:[%s1385_s8] ss:$0 sm:$0xff] }
 0x2a9   :  { %v348_v45 = vadd.f32 %v857_v39, %v347_v43 }
 0x2aa   :  { %v367_v47 = vmax.f32 %v353_v42, 0.0 }
 0x2ab   :  { %v366_v48 = vmax.f32 %v348_v45, 0.0  ;;  %v953_v49 = vpop.f32.mrb[2].mxu1 }
 0x2ac   :  { %v1267_v50 = vadd.f32 %v462_v44, %v367_v47  ;;  %v363_v51 = vadd.f32 %v953_v49, %v857_v39  ;;  %v357_v52 = vpop.f32.mrb[3].mxu1 }
 0x2ad   :  { %v1269_v54 = vadd.f32 %v457_v46, %v366_v48  ;;  %v358_v55 = vadd.f32 %v857_v39, %v357_v52  ;;  %v704_v39 = vld [vmem:[%s1386_s9 + $0x38] sm:$0xff] }
 0x2ae   :  { %v480_v57 = vmax.f32 %v1267_v50, 0.0  ;;  %v369_v58 = vmax.f32 %v363_v51, 0.0  ;;  %v1050_v40 = vpack.c.bf16 %v704_v39, %v703_v38 }
 0x2af   :  { %v479_v59 = vmax.f32 %v1269_v54, 0.0  ;;  %v368_v60 = vmax.f32 %v358_v55, 0.0 }
 0x2b0   :  { %v488_v61 = vrot.slane %v480_v57, 6  ;;  %v1275_v62 = vadd.f32 %v472_v53, %v369_v58  ;;  %1051 = vmatprep.subr.bf16.mxu1 %v1050_v40 }
 0x2b1   :  { %v487_v63 = vrot.slane %v479_v59, 6  ;;  %v1279_v0 = vadd.f32 %v467_v56, %v368_v60  ;;  %1053 = vmatpush3.bf16.msra.mxu1 %v1050_v40 }
 0x2b2   :  { %v497_v1 = vsel %vm495_vm7, 0.0, %v488_v61  ;;  %v482_v2 = vmax.f32 %v1275_v62, 0.0  ;;  %v509_v3 = vrot.slane %v488_v61, 2 }
 0x2b3   :  { %v496_v4 = vsel %vm495_vm7, 0.0, %v487_v63  ;;  %v481_v5 = vmax.f32 %v1279_v0, 0.0  ;;  %v508_v6 = vrot.slane %v497_v1, 2  ;;  %v506_v7 = vrot.slane %v487_v63, 2 }
 0x2b4   :  { %v490_v8 = vrot.slane %v482_v2, 6  ;;  %v505_v9 = vrot.slane %v496_v4, 2 }
 0x2b5   :  { %v489_v10 = vrot.slane %v481_v5, 6  ;;  %v510_v11 = vsel %vm504_vm8, %v508_v6, %v509_v3 }
 0x2b6   :  { %v499_v12 = vsel %vm495_vm7, 0.0, %v490_v8  ;;  %519 = vrot.lane.b32.xlu1 %v510_v11, %s1082_s2  ;;  %v507_v13 = vsel %vm504_vm8, %v505_v9, %v506_v7  ;;  %v515_v14 = vrot.slane %v490_v8, 2 }
 0x2b7   :  { %v498_v15 = vsel %vm495_vm7, 0.0, %v489_v10  ;;  %517 = vrot.lane.b32.xlu0 %v507_v13, %s1082_s2  ;;  %v514_v16 = vrot.slane %v499_v12, 2  ;;  %v512_v17 = vrot.slane %v489_v10, 2 }
 0x2b8   :  { %v511_v18 = vrot.slane %v498_v15, 2 }
 0x2b9   :  { %v516_v19 = vsel %vm504_vm8, %v514_v16, %v515_v14 }
 0x2ba   :  { %523 = vrot.lane.b32.xlu1 %v516_v19, %s1082_s2  ;;  %v513_v20 = vsel %vm504_vm8, %v511_v18, %v512_v17 }
 0x2bb   :  { %521 = vrot.lane.b32.xlu0 %v513_v20, %s1082_s2 }
 0x328   :  { %v520_v21 = vpop.permute.xlu1 %519 }
 0x329   :  { %v518_v22 = vpop.permute.xlu0 %517  ;;  %v530_v24 = vsel %vm248_vm5, %v497_v1, %v520_v21 }
 0x32a   :  { %v529_v23 = vsel %vm248_vm5, %v496_v4, %v518_v22 }
 0x32b   :  { %978 = vmatprep.mubr.msk.f32.mxu0 %vm268_vm6, %v529_v23 }
 0x32c   :  { %v524_v25 = vpop.permute.xlu1 %523  ;;  %979 = vmatmul.mubr.msk.f32.vlgmr.msra.gmra.mrb[8].mxu0 %vm268_vm6, %v530_v24 }
 0x32d   :  { %v522_v26 = vpop.permute.xlu0 %521  ;;  %v532_v28 = vsel %vm248_vm5, %v499_v12, %v524_v25 }
 0x32e   :  { %v531_v27 = vsel %vm248_vm5, %v498_v15, %v522_v26  ;;  %v873_v26 = vld [vmem:[%s1387_s10] ss:$0 sm:$0xff]  ;;  %s1083_s10 = smov [#allocation2]  }
 0x32f   :  { %981 = vmatprep.mubr.msk.f32.mxu0 %vm268_vm6, %v531_v27 }
 0x330   :  { %982 = vmatmul.mubr.msk.f32.gmra.mrb[10].mxu0 %vm268_vm6, %v532_v28 }
 0x3ff   :  { %v980_v42 = vpop.f32.mrb[8].mxu0 }
 0x400   :  { %v632_v43 = vadd.f32 %v980_v42, %v868_v41  ;;  %v626_v44 = vpop.f32.mrb[9].mxu0 }
 0x401   :  { %v627_v45 = vadd.f32 %v868_v41, %v626_v44 }
 0x402   :  { %v646_v46 = vmax.f32 %v632_v43, 0.0 }
 0x403   :  { %v645_v47 = vmax.f32 %v627_v45, 0.0  ;;  %v983_v48 = vpop.f32.mrb[10].mxu0 }
 0x404   :  { %v654_v49 = vrot.slane %v646_v46, 6  ;;  %v642_v51 = vadd.f32 %v983_v48, %v868_v41  ;;  %v636_v52 = vpop.f32.mrb[11].mxu0 }
 0x405   :  { %v653_v53 = vrot.slane %v645_v47, 6  ;;  %v637_v55 = vadd.f32 %v868_v41, %v636_v52 }
 0x406   :  { %v662_v56 = vsel %vm495_vm7, 0.0, %v654_v49  ;;  %v673_v58 = vrot.slane %v654_v49, 2  ;;  %v648_v60 = vmax.f32 %v642_v51, 0.0 }
 0x407   :  { %v672_v61 = vrot.slane %v662_v56, 2  ;;  %v661_v63 = vsel %vm495_vm7, 0.0, %v653_v53  ;;  %v670_v1 = vrot.slane %v653_v53, 2  ;;  %v647_v3 = vmax.f32 %v637_v55, 0.0 }
 0x408   :  { %v669_v4 = vrot.slane %v661_v63, 2  ;;  %v656_v6 = vrot.slane %v648_v60, 6 }
 0x409   :  { %v655_v7 = vrot.slane %v647_v3, 6  ;;  %v674_v8 = vsel %vm504_vm8, %v672_v61, %v673_v58 }
 0x40a   :  { %v664_v9 = vsel %vm495_vm7, 0.0, %v656_v6  ;;  %v679_v10 = vrot.slane %v656_v6, 2  ;;  %683 = vrot.lane.b32.xlu1 %v674_v8, %s1082_s2  ;;  %v671_v11 = vsel %vm504_vm8, %v669_v4, %v670_v1 }
 0x40b   :  { %v678_v12 = vrot.slane %v664_v9, 2  ;;  %v663_v13 = vsel %vm495_vm7, 0.0, %v655_v7  ;;  %v676_v14 = vrot.slane %v655_v7, 2  ;;  %681 = vrot.lane.b32.xlu0 %v671_v11, %s1082_s2 }
 0x40c   :  { %v675_v15 = vrot.slane %v663_v13, 2 }
 0x40d   :  { %v680_v16 = vsel %vm504_vm8, %v678_v12, %v679_v10 }
 0x40e   :  { %687 = vrot.lane.b32.xlu1 %v680_v16, %s1082_s2  ;;  %v677_v17 = vsel %vm504_vm8, %v675_v15, %v676_v14 }
 0x40f   :  { %685 = vrot.lane.b32.xlu0 %v677_v17, %s1082_s2  ;;  %s844_s2 = sshll.u32 %s1083_s10, 4  ;;  %s845_s2 = int_to_ptr.vmem [resolvable:$true] %s844_s2 }
 0x410   :  { %s1057_s16 = scalar_lea.vmem %s845_s2, 64  ;;  %p1062_p1 = scmp.lt.s32.totalorder %s845_s2, %s845_s2 }
 0x411   :  { %p1058_p0 = scmp.ne.s32.totalorder %s845_s2, %s1057_s16  ;;  %p1063_p2 = scmp.lt.s32.totalorder %s1057_s16, %s1057_s16 }
 0x413   :  { %p1064_p3 = por %p1063_p2, %p1062_p1 }
 0x415   :  { %p1065_p4 = pnand %p1064_p3, %p1058_p0 }
 0x47c   :  { %v684_v18 = vpop.permute.xlu1 %683 }
 0x47d   :  { %v682_v19 = vpop.permute.xlu0 %681  ;;  %v694_v21 = vsel %vm248_vm5, %v662_v56, %v684_v18 }
 0x47e   :  { %v693_v20 = vsel %vm248_vm5, %v661_v63, %v682_v19 }
 0x47f   :  { %1000 = vmatprep.mubr.msk.f32.mxu1 %vm268_vm6, %v693_v20 }
 0x480   :  { %v688_v22 = vpop.permute.xlu1 %687  ;;  %1001 = vmatmul.mubr.msk.f32.vlgmr.msra.gmra.mrb[4].mxu1 %vm268_vm6, %v694_v21 }
 0x481   :  { %v686_v23 = vpop.permute.xlu0 %685  ;;  %v696_v25 = vsel %vm248_vm5, %v664_v9, %v688_v22 }
 0x482   :  { %v695_v24 = vsel %vm248_vm5, %v663_v13, %v686_v23 }
 0x483   :  { %1003 = vmatprep.mubr.msk.f32.mxu1 %vm268_vm6, %v695_v24 }
 0x484   :  { %1004 = vmatmul.mubr.msk.f32.gmra.mrb[6].mxu1 %vm268_vm6, %v696_v25 }
 0x553   :  { %v1002_v27 = vpop.f32.mrb[4].mxu1 }
 0x554   :  { %v796_v28 = vadd.f32 %v1002_v27, %v873_v26  ;;  %v790_v29 = vpop.f32.mrb[5].mxu1 }
 0x555   :  { %v791_v30 = vadd.f32 %v873_v26, %v790_v29 }
 0x556   :  { %v810_v31 = vmax.f32 %v796_v28, 0.0 }
 0x557   :  { %v809_v32 = vmax.f32 %v791_v30, 0.0  ;;  %v1005_v33 = vpop.f32.mrb[6].mxu1 }
 0x558   :  { %v806_v34 = vadd.f32 %v1005_v33, %v873_v26  ;;  %v800_v35 = vpop.f32.mrb[7].mxu1  ;;  %v814_v36 = vadd.f32 %v810_v31, %v480_v57 }
 0x559   :  { %v813_v37 = vadd.f32 %v809_v32, %v479_v59  ;;  %v801_v38 = vadd.f32 %v873_v26, %v800_v35 }
 0x55a   :  { %v812_v39 = vmax.f32 %v806_v34, 0.0  ;;  %v818_v43 = vmax.f32 %v814_v36, 0.0 }
 0x55b   :  { %v817_v40 = vmax.f32 %v813_v37, 0.0  ;;  %v811_v41 = vmax.f32 %v801_v38, 0.0 }
 0x55c   :  { %v816_v42 = vadd.f32 %v812_v39, %v482_v2  ;;  %v825_v50 = vrot.slane %v818_v43, 7 }
 0x55d   :  { %v815_v44 = vadd.f32 %v811_v41, %v481_v5  ;;  %835 = vst.msk [vmem:[#allocation2 - $0x7] sm:$0x80] %vm834_vm9, %v817_v40 }
 0x55e   :  { %v820_v45 = vmax.f32 %v816_v42, 0.0 }
 0x55f   :  { %v819_v46 = vmax.f32 %v815_v44, 0.0 }
 0x560   :  { %v829_v57 = vrot.slane %v820_v45, 5 }
 0x561   :  { %v826_v54 = vrot.slane %v819_v46, 6 }
 0x563   :  { %v828_v59 = vsel %vm827_vm10, %v826_v54, %v825_v50 }
 0x564   :  { %v831_v47 = vsel %vm830_vm11, %v829_v57, %v828_v59 }
 0x565   :  { %837 = vst.msk [vmem:[#allocation2 + $0x1] sm:$0x7] %vm836_vm12, %v831_v47 }
 0x566   :  { %1068 = shalt.err (!%p1065_p4)
}
 0x567   :  { %s1069_s19 = scalar_lea.hbm %s1388_s11, 64 }
 0x568   :  { %p1070_p5 = scmp.ne.s32.totalorder %s1388_s11, %s1069_s19  ;;  %p1073_p6 = scmp.lt.u32.totalorder %s1069_s19, %s1388_s11 }
 0x56a   :  { %p1075_p7 = pnand %p1073_p6, %p1070_p5 }
 0x56c   :  { %1078 = shalt.err (!%p1075_p7)
}
 0x56d   :  { %847 = dma.vmem_to_hbm [thread:$0]  %s845_s2, 64, %s1388_s11, [#allocation3]  }
 0x56e   :  { %1079 = dma.done.wait [#allocation3], 64  }
 0x56f   :  { %1080 = vsyncadd [#allocation3], 4294967232 }
 0x570   :  { %851 = vsyncpa [#allocation3], 1 }

</bundles_post_ra>
